<compile_context>
chip_gen: v5e
topology: v5e:2x2
jax: 0.10.0
libtpu: 0.0.40
codegen_flags: <defaults>
</compile_context>

<pallas_src>
import math
import functools

import jax
import jax.numpy as jnp
from jax.experimental import pallas as pl
from jax.experimental.pallas import tpu as pltpu


LN_EPS = 1e-12  # BERT LayerNorm epsilon


# ---------------------------------------------------------------------------
# Hardware-aware helpers
# ---------------------------------------------------------------------------
def _softmax_exp_dtype():
    """bf16 exp on chips with a bf16 EUP (v6e/v7x); f32 elsewhere (v5e)."""
    try:
        kind = jax.devices()[0].device_kind.lower()
    except Exception:
        return jnp.float32
    if ("v6" in kind) or ("v7" in kind) or ("7x" in kind):
        return jnp.bfloat16
    return jnp.float32


def _layer_vmem_bytes(S, H, I, act_itemsize):
    """Approximate per-grid-step VMEM need, including in-kernel temporaries."""
    f32, bf16 = 4, 2
    io = 2 * 2 * S * H * act_itemsize                       # x + out, double-buffered
    w = bf16 * (3 * H * H + H * H + H * I + I * H)          # bf16 weights (Buffered(1))
    w += f32 * (3 * H + 5 * H + I + 2 * H)                  # biases + LN params
    tmp = (f32 * S * 3 * H                                   # qkv (f32)
           + 3 * bf16 * S * H                                # q / k / v (bf16)
           + 2 * f32 * S * S                                 # ~2 live (S,S) f32 score blocks
           + bf16 * S * H                                    # ctx scratch (bf16)
           + 3 * f32 * S * H                                 # proj / attn / residual (f32)
           + f32 * S * I + bf16 * S * I)                     # FFN intermediate f32 + bf16
    return io + w + tmp


def _vmem_limit_bytes(need_bytes):
    try:
        cap = int(pltpu.get_tpu_info().vmem_capacity_bytes)
    except Exception:
        cap = 64 << 20          # conservative fallback (v7x per-core VMEM)
    hi = max((cap * 3) // 4, 32 << 20)   # leave headroom for the compiler
    return int(min(max(need_bytes + (8 << 20), 32 << 20), hi))


# ---------------------------------------------------------------------------
# Fused encoder-layer kernel:
#   QKV -> per-head attention -> self-output dense + residual + LN
#       -> FFN dense -> GELU -> dense -> residual -> LN
# ---------------------------------------------------------------------------
def _layer_norm_f32(y, g, b):
    mean = jnp.mean(y, axis=-1, keepdims=True)
    var = jnp.mean(jnp.square(y - mean), axis=-1, keepdims=True)
    return (y - mean) * jax.lax.rsqrt(var + LN_EPS) * g + b


def _bert_layer_kernel(x_ref, wqkv_ref, bqkv_ref, wao_ref, bao_ref,
                       g1_ref, b1_ref, wi_ref, bi_ref, wo_ref, bo_ref,
                       g2_ref, b2_ref, o_ref, ctx_ref,
                       *, num_heads, head_size, exp_dtype):
    x_raw = x_ref[0]                                  # (S, H) activation dtype
    S, H = x_raw.shape
    x = x_raw.astype(jnp.float32)                     # f32 residual / LN math
    x_bf = x_raw.astype(jnp.bfloat16)                 # bf16 MXU operand

    # Fused QKV projection: one MXU pass over the [H, 3H] weight.
    # Q columns / Q bias were pre-scaled by 1/sqrt(head_size) in the wrapper.
    qkv = jnp.dot(x_bf, wqkv_ref[...],
                  preferred_element_type=jnp.float32) + bqkv_ref[0]   # (S, 3H) f32
    q = qkv[:, :H].astype(jnp.bfloat16)
    k = qkv[:, H:2 * H].astype(jnp.bfloat16)
    v = qkv[:, 2 * H:].astype(jnp.bfloat16)

    # Per-head attention; each head's context slab is written directly into
    # the bf16 VMEM scratch (no list + concatenate -> bounded live ranges).
    for h in range(num_heads):
        sl = slice(h * head_size, (h + 1) * head_size)
        qh, kh, vh = q[:, sl], k[:, sl], v[:, sl]
        scores = jax.lax.dot_general(
            qh, kh, (((1,), (1,)), ((), ())),
            preferred_element_type=jnp.float32)       # (S, S) f32
        m = jnp.max(scores, axis=-1, keepdims=True)
        e = jnp.exp((scores - m).astype(exp_dtype)).astype(jnp.float32)
        denom = jnp.sum(e, axis=-1, keepdims=True)
        probs = (e * pl.reciprocal(denom, approx=True)).astype(jnp.bfloat16)
        ctx_ref[:, sl] = jnp.dot(
            probs, vh, preferred_element_type=jnp.float32).astype(jnp.bfloat16)

    # Self-output dense + residual + LayerNorm.
    proj = jnp.dot(ctx_ref[...], wao_ref[...],
                   preferred_element_type=jnp.float32) + bao_ref[0]
    attn = _layer_norm_f32(proj + x, g1_ref[0], b1_ref[0])            # (S, H) f32

    # FFN: dense -> GELU -> (bf16 intermediate) -> dense -> residual -> LN.
    inter = jnp.dot(attn.astype(jnp.bfloat16), wi_ref[...],
                    preferred_element_type=jnp.float32)
    inter = jax.nn.gelu(inter + bi_ref[0], approximate=True).astype(jnp.bfloat16)
    ffn = jnp.dot(inter, wo_ref[...],
                  preferred_element_type=jnp.float32) + bo_ref[0]
    out = _layer_norm_f32(ffn + attn, g2_ref[0], b2_ref[0])
    o_ref[0] = out.astype(o_ref.dtype)                # single lane-dense store


def bert_layer(x, lp, *, num_heads, exp_dtype):
    B, S, H = x.shape
    I = lp["wi"].shape[1]
    assert H % num_heads == 0
    hd = H // num_heads
    kernel = functools.partial(_bert_layer_kernel, num_heads=num_heads,
                               head_size=hd, exp_dtype=exp_dtype)

    def _w(shape):
        # Grid-invariant operand: constant index_map, single-buffered.
        return pl.BlockSpec(shape, lambda b, _n=len(shape): (0,) * _n,
                            pipeline_mode=pl.Buffered(1))

    need = _layer_vmem_bytes(S, H, I, jnp.dtype(x.dtype).itemsize)

    flops = B * (2 * S * H * 3 * H              # fused QKV projection
                 + 4 * S * S * H                # QK^T and PV over all heads
                 + 2 * S * H * H                # attention output projection
                 + 4 * S * H * I)               # FFN (two dense layers)
    transcendentals = B * (num_heads * S * S + S * I + 2 * S)
    act_bytes = jnp.dtype(x.dtype).itemsize
    bytes_accessed = (2 * B * S * H * act_bytes
                      + 2 * (3 * H * H + H * H + H * I + I * H)     # bf16 weights
                      + 4 * (3 * H + 5 * H + I + 2 * H))            # f32 bias/LN

    return pl.pallas_call(
        kernel,
        out_shape=jax.ShapeDtypeStruct((B, S, H), x.dtype),
        grid_spec=pltpu.PrefetchScalarGridSpec(
            num_scalar_prefetch=0,
            grid=(B,),
            in_specs=[
                pl.BlockSpec((1, S, H), lambda b: (b, 0, 0)),   # x (activations)
                _w((H, 3 * H)),                                 # Wqkv (bf16)
                _w((1, 3 * H)),                                 # bqkv
                _w((H, H)),                                     # W_attn_out (bf16)
                _w((1, H)),                                     # b_attn_out
                _w((1, H)), _w((1, H)),                         # LN1 gamma/beta
                _w((H, I)),                                     # W_inter (bf16)
                _w((1, I)),                                     # b_inter
                _w((I, H)),                                     # W_out (bf16)
                _w((1, H)),                                     # b_out
                _w((1, H)), _w((1, H)),                         # LN2 gamma/beta
            ],
            out_specs=pl.BlockSpec((1, S, H), lambda b: (b, 0, 0)),
            scratch_shapes=[pltpu.VMEM((S, H), jnp.bfloat16)],  # ctx buffer
        ),
        compiler_params=pltpu.CompilerParams(
            dimension_semantics=("parallel",),
            vmem_limit_bytes=_vmem_limit_bytes(need),
        ),
        cost_estimate=pl.CostEstimate(
            flops=int(flops),
            transcendentals=int(transcendentals),
            bytes_accessed=int(bytes_accessed),
        ),
    )(x, lp["wqkv"], lp["bqkv"], lp["wao"], lp["bao"], lp["ln1_g"], lp["ln1_b"],
      lp["wi"], lp["bi"], lp["wo"], lp["bo"], lp["ln2_g"], lp["ln2_b"])


# ---------------------------------------------------------------------------
# Encoder wrappers
# ---------------------------------------------------------------------------
def prepare_layer_params(raw, num_heads):
    """Fuse QKV weights (1/sqrt(hd) folded into Q) and cast MXU weights to bf16."""
    H = raw["wq"].shape[0]
    hd = H // num_heads
    scale = 1.0 / math.sqrt(hd)
    wqkv = jnp.concatenate([raw["wq"] * scale, raw["wk"], raw["wv"]],
                           axis=1).astype(jnp.bfloat16)
    bqkv = jnp.concatenate([raw["bq"] * scale, raw["bk"], raw["bv"]]
                           ).reshape(1, -1).astype(jnp.float32)
    return dict(
        wqkv=wqkv, bqkv=bqkv,
        wao=raw["wao"].astype(jnp.bfloat16),
        bao=raw["bao"].reshape(1, -1).astype(jnp.float32),
        ln1_g=raw["ln1_g"].reshape(1, -1).astype(jnp.float32),
        ln1_b=raw["ln1_b"].reshape(1, -1).astype(jnp.float32),
        wi=raw["wi"].astype(jnp.bfloat16),
        bi=raw["bi"].reshape(1, -1).astype(jnp.float32),
        wo=raw["wo"].astype(jnp.bfloat16),
        bo=raw["bo"].reshape(1, -1).astype(jnp.float32),
        ln2_g=raw["ln2_g"].reshape(1, -1).astype(jnp.float32),
        ln2_b=raw["ln2_b"].reshape(1, -1).astype(jnp.float32),
    )


def modified_bert_encoder(x, layer_params, *, num_heads,
                          activation_dtype=jnp.bfloat16):
    """Run the stacked encoder; inter-layer activations kept in activation_dtype."""
    exp_dtype = _softmax_exp_dtype()
    h = x.astype(activation_dtype)
    for lp in layer_params:
        h = bert_layer(h, lp, num_heads=num_heads, exp_dtype=exp_dtype)
    return h.astype(x.dtype)


# ---------------------------------------------------------------------------
# Pure-JAX f32 reference matching the PyTorch module semantics
# ---------------------------------------------------------------------------
def reference_encoder(x, raw_layers, num_heads):
    def layer_norm(y, g, b):
        mean = jnp.mean(y, axis=-1, keepdims=True)
        var = jnp.mean(jnp.square(y - mean), axis=-1, keepdims=True)
        return (y - mean) / jnp.sqrt(var + LN_EPS) * g + b

    B, S, H = x.shape
    hd = H // num_heads
    h = x
    for p in raw_layers:
        q = h @ p["wq"] + p["bq"]
        k = h @ p["wk"] + p["bk"]
        v = h @ p["wv"] + p["bv"]

        def split(t):
            return t.reshape(B, S, num_heads, hd).transpose(0, 2, 1, 3)

        qh, kh, vh = split(q), split(k), split(v)
        scores = jnp.einsum("bnqd,bnkd->bnqk", qh, kh) / math.sqrt(hd)
        probs = jax.nn.softmax(scores, axis=-1)
        ctx = jnp.einsum("bnqk,bnkd->bnqd", probs, vh)
        ctx = ctx.transpose(0, 2, 1, 3).reshape(B, S, H)
        attn = layer_norm(ctx @ p["wao"] + p["bao"] + h, p["ln1_g"], p["ln1_b"])
        # TODO(synk): if the wrapped HF model uses exact (erf) GELU, switch both
        # kernel and reference to approximate=False.
        inter = jax.nn.gelu(attn @ p["wi"] + p["bi"], approximate=True)
        h = layer_norm(inter @ p["wo"] + p["bo"] + attn, p["ln2_g"], p["ln2_b"])
    return h


if __name__ == "__main__":
    # Small shapes consistent with the module: batch=2, seq=8, hidden=32,
    # 4 heads, intermediate=4*hidden, 2 encoder layers.
    B, S, H = 2, 8, 32
    NUM_HEADS = 4
    INTER = 4 * H
    NUM_LAYERS = 2

    key = jax.random.PRNGKey(0)

    def make_layer(k):
        ks = jax.random.split(k, 16)
        return dict(
            wq=jax.random.normal(ks[0], (H, H), jnp.float32) * 0.05,
            wk=jax.random.normal(ks[1], (H, H), jnp.float32) * 0.05,
            wv=jax.random.normal(ks[2], (H, H), jnp.float32) * 0.05,
            bq=jax.random.normal(ks[3], (H,), jnp.float32) * 0.01,
            bk=jax.random.normal(ks[4], (H,), jnp.float32) * 0.01,
            bv=jax.random.normal(ks[5], (H,), jnp.float32) * 0.01,
            wao=jax.random.normal(ks[6], (H, H), jnp.float32) * 0.05,
            bao=jax.random.normal(ks[7], (H,), jnp.float32) * 0.01,
            ln1_g=1.0 + 0.1 * jax.random.normal(ks[8], (H,), jnp.float32),
            ln1_b=0.05 * jax.random.normal(ks[9], (H,), jnp.float32),
            wi=jax.random.normal(ks[10], (H, INTER), jnp.float32) * 0.05,
            bi=jax.random.normal(ks[11], (INTER,), jnp.float32) * 0.01,
            wo=jax.random.normal(ks[12], (INTER, H), jnp.float32) * 0.05,
            bo=jax.random.normal(ks[13], (H,), jnp.float32) * 0.01,
            ln2_g=1.0 + 0.1 * jax.random.normal(ks[14], (H,), jnp.float32),
            ln2_b=0.05 * jax.random.normal(ks[15], (H,), jnp.float32),
        )

    key, xkey = jax.random.split(key)
    hidden = jax.random.normal(xkey, (B, S, H), jnp.float32)
    layer_keys = jax.random.split(key, NUM_LAYERS)
    raw_layers = [make_layer(k) for k in layer_keys]
    prepared = [prepare_layer_params(p, NUM_HEADS) for p in raw_layers]

    out = modified_bert_encoder(hidden, prepared, num_heads=NUM_HEADS)
    out = jax.block_until_ready(out)

    ref = reference_encoder(hidden, raw_layers, NUM_HEADS)
    assert out.shape == (B, S, H)
    max_err = float(jnp.max(jnp.abs(out - ref)))
    # bf16 MXU operands + bf16 inter-layer activations + approx reciprocal
    # => relaxed tolerance vs the f32 reference.
    assert jnp.allclose(out, ref, atol=5e-2, rtol=5e-2), \
        f"mismatch vs reference (max abs err {max_err})"

    print("KERNEL_OK")
</pallas_src>

<mosaic_0001>
module attributes {stable_mosaic.version = 11 : i64} {
  func.func @_bert_layer_kernel(%arg0: i32, %arg1: memref<1x8x32xbf16, #tpu.memory_space<vmem>>, %arg2: memref<32x96xbf16, #tpu.memory_space<vmem>>, %arg3: memref<1x96xf32, #tpu.memory_space<vmem>>, %arg4: memref<32x32xbf16, #tpu.memory_space<vmem>>, %arg5: memref<1x32xf32, #tpu.memory_space<vmem>>, %arg6: memref<1x32xf32, #tpu.memory_space<vmem>>, %arg7: memref<1x32xf32, #tpu.memory_space<vmem>>, %arg8: memref<32x128xbf16, #tpu.memory_space<vmem>>, %arg9: memref<1x128xf32, #tpu.memory_space<vmem>>, %arg10: memref<128x32xbf16, #tpu.memory_space<vmem>>, %arg11: memref<1x32xf32, #tpu.memory_space<vmem>>, %arg12: memref<1x32xf32, #tpu.memory_space<vmem>>, %arg13: memref<1x32xf32, #tpu.memory_space<vmem>>, %arg14: memref<1x8x32xbf16, #tpu.memory_space<vmem>>, %arg15: memref<8x32xbf16, #tpu.memory_space<vmem>>) attributes {dimension_semantics = [#tpu.dimension_semantics<parallel>], iteration_bounds = array<i64: 2>, scalar_prefetch = 0 : i64, scratch_operands = 1 : i64, tpu.core_type = #tpu.core_type<tc>, window_params = [{transform_indices = @transform_0, window_bounds = array<i64: 1, 8, 32>}, {pipeline_mode = #tpu.pipeline_mode<synchronous>, transform_indices = @transform_1, window_bounds = array<i64: 32, 96>}, {pipeline_mode = #tpu.pipeline_mode<synchronous>, transform_indices = @transform_2, window_bounds = array<i64: 1, 96>}, {pipeline_mode = #tpu.pipeline_mode<synchronous>, transform_indices = @transform_3, window_bounds = array<i64: 32, 32>}, {pipeline_mode = #tpu.pipeline_mode<synchronous>, transform_indices = @transform_4, window_bounds = array<i64: 1, 32>}, {pipeline_mode = #tpu.pipeline_mode<synchronous>, transform_indices = @transform_5, window_bounds = array<i64: 1, 32>}, {pipeline_mode = #tpu.pipeline_mode<synchronous>, transform_indices = @transform_6, window_bounds = array<i64: 1, 32>}, {pipeline_mode = #tpu.pipeline_mode<synchronous>, transform_indices = @transform_7, window_bounds = array<i64: 32, 128>}, {pipeline_mode = #tpu.pipeline_mode<synchronous>, transform_indices = @transform_8, window_bounds = array<i64: 1, 128>}, {pipeline_mode = #tpu.pipeline_mode<synchronous>, transform_indices = @transform_9, window_bounds = array<i64: 128, 32>}, {pipeline_mode = #tpu.pipeline_mode<synchronous>, transform_indices = @transform_10, window_bounds = array<i64: 1, 32>}, {pipeline_mode = #tpu.pipeline_mode<synchronous>, transform_indices = @transform_11, window_bounds = array<i64: 1, 32>}, {pipeline_mode = #tpu.pipeline_mode<synchronous>, transform_indices = @transform_12, window_bounds = array<i64: 1, 32>}, {transform_indices = @transform_13, window_bounds = array<i64: 1, 8, 32>}]} {
    %c0 = arith.constant 0 : index
    %c0_0 = arith.constant 0 : index
    %c0_1 = arith.constant 0 : index
    %0 = vector.load %arg1[%c0, %c0_0, %c0_1] : memref<1x8x32xbf16, #tpu.memory_space<vmem>>, vector<1x8x32xbf16>
    %1 = vector.shape_cast %0 : vector<1x8x32xbf16> to vector<8x32xbf16>
    %2 = arith.extf %1 : vector<8x32xbf16> to vector<8x32xf32>
    %c0_2 = arith.constant 0 : index
    %c0_3 = arith.constant 0 : index
    %3 = vector.load %arg2[%c0_2, %c0_3] : memref<32x96xbf16, #tpu.memory_space<vmem>>, vector<32x96xbf16>
    %cst = arith.constant dense<0.000000e+00> : vector<8x96xf32>
    %4 = tpu.matmul %1, %3, %cst {dimension_numbers = #tpu.dot_dimension_numbers<[1], [0], [0], [1], [0, 0, 1, 1], [], []>} : vector<8x32xbf16>, vector<32x96xbf16>, vector<8x96xf32> -> vector<8x96xf32>
    %c0_4 = arith.constant 0 : index
    %c0_5 = arith.constant 0 : index
    %5 = vector.load %arg3[%c0_4, %c0_5] : memref<1x96xf32, #tpu.memory_space<vmem>>, vector<1x96xf32>
    %6 = vector.shape_cast %5 : vector<1x96xf32> to vector<96xf32>
    %7 = vector.shape_cast %6 : vector<96xf32> to vector<1x96xf32>
    %8 = vector.broadcast %7 : vector<1x96xf32> to vector<8x96xf32>
    %9 = arith.addf %4, %8 : vector<8x96xf32>
    %10 = vector.extract_strided_slice %9 {offsets = [0, 0], sizes = [8, 32], strides = [1, 1]} : vector<8x96xf32> to vector<8x32xf32>
    %11 = arith.truncf %10 : vector<8x32xf32> to vector<8x32xbf16>
    %12 = vector.extract_strided_slice %9 {offsets = [0, 32], sizes = [8, 32], strides = [1, 1]} : vector<8x96xf32> to vector<8x32xf32>
    %13 = arith.truncf %12 : vector<8x32xf32> to vector<8x32xbf16>
    %14 = vector.extract_strided_slice %9 {offsets = [0, 64], sizes = [8, 32], strides = [1, 1]} : vector<8x96xf32> to vector<8x32xf32>
    %15 = arith.truncf %14 : vector<8x32xf32> to vector<8x32xbf16>
    %16 = vector.extract_strided_slice %11 {offsets = [0, 0], sizes = [8, 8], strides = [1, 1]} : vector<8x32xbf16> to vector<8x8xbf16>
    %17 = vector.extract_strided_slice %13 {offsets = [0, 0], sizes = [8, 8], strides = [1, 1]} : vector<8x32xbf16> to vector<8x8xbf16>
    %18 = vector.extract_strided_slice %15 {offsets = [0, 0], sizes = [8, 8], strides = [1, 1]} : vector<8x32xbf16> to vector<8x8xbf16>
    %cst_6 = arith.constant dense<0.000000e+00> : vector<8x8xf32>
    %19 = tpu.matmul %16, %17, %cst_6 {dimension_numbers = #tpu.dot_dimension_numbers<[1], [1], [0], [0], [0, 0, 1, 0], [], []>} : vector<8x8xbf16>, vector<8x8xbf16>, vector<8x8xf32> -> vector<8x8xf32>
    %cst_7 = arith.constant dense<0xFF800000> : vector<8xf32>
    %20 = vector.multi_reduction <maximumf>, %19, %cst_7 [1] : vector<8x8xf32> to vector<8xf32>
    %21 = vector.shape_cast %20 : vector<8xf32> to vector<8x1xf32>
    %22 = vector.broadcast %21 : vector<8x1xf32> to vector<8x8xf32>
    %23 = arith.subf %19, %22 : vector<8x8xf32>
    %24 = math.exp %23 : vector<8x8xf32>
    %cst_8 = arith.constant dense<0.000000e+00> : vector<8xf32>
    %25 = vector.multi_reduction <add>, %24, %cst_8 [1] : vector<8x8xf32> to vector<8xf32>
    %26 = vector.shape_cast %25 : vector<8xf32> to vector<8x1xf32>
    %27 = tpu.reciprocal %26 {approx = true} : vector<8x1xf32> -> vector<8x1xf32>
    %28 = vector.broadcast %27 : vector<8x1xf32> to vector<8x8xf32>
    %29 = arith.mulf %24, %28 : vector<8x8xf32>
    %30 = arith.truncf %29 : vector<8x8xf32> to vector<8x8xbf16>
    %cst_9 = arith.constant dense<0.000000e+00> : vector<8x8xf32>
    %31 = tpu.matmul %30, %18, %cst_9 {dimension_numbers = #tpu.dot_dimension_numbers<[1], [0], [0], [1], [0, 0, 1, 1], [], []>} : vector<8x8xbf16>, vector<8x8xbf16>, vector<8x8xf32> -> vector<8x8xf32>
    %32 = arith.truncf %31 : vector<8x8xf32> to vector<8x8xbf16>
    %c0_10 = arith.constant 0 : index
    %c0_11 = arith.constant 0 : index
    %33 = vector.load %arg15[%c0_10, %c0_11] : memref<8x32xbf16, #tpu.memory_space<vmem>>, vector<8x8xbf16>
    tpu.vector_store %arg15[%c0_10, %c0_11], %32 {strides = array<i32>} : memref<8x32xbf16, #tpu.memory_space<vmem>>, vector<8x8xbf16>,
    %34 = vector.extract_strided_slice %11 {offsets = [0, 8], sizes = [8, 8], strides = [1, 1]} : vector<8x32xbf16> to vector<8x8xbf16>
    %35 = vector.extract_strided_slice %13 {offsets = [0, 8], sizes = [8, 8], strides = [1, 1]} : vector<8x32xbf16> to vector<8x8xbf16>
    %36 = vector.extract_strided_slice %15 {offsets = [0, 8], sizes = [8, 8], strides = [1, 1]} : vector<8x32xbf16> to vector<8x8xbf16>
    %cst_12 = arith.constant dense<0.000000e+00> : vector<8x8xf32>
    %37 = tpu.matmul %34, %35, %cst_12 {dimension_numbers = #tpu.dot_dimension_numbers<[1], [1], [0], [0], [0, 0, 1, 0], [], []>} : vector<8x8xbf16>, vector<8x8xbf16>, vector<8x8xf32> -> vector<8x8xf32>
    %cst_13 = arith.constant dense<0xFF800000> : vector<8xf32>
    %38 = vector.multi_reduction <maximumf>, %37, %cst_13 [1] : vector<8x8xf32> to vector<8xf32>
    %39 = vector.shape_cast %38 : vector<8xf32> to vector<8x1xf32>
    %40 = vector.broadcast %39 : vector<8x1xf32> to vector<8x8xf32>
    %41 = arith.subf %37, %40 : vector<8x8xf32>
    %42 = math.exp %41 : vector<8x8xf32>
    %cst_14 = arith.constant dense<0.000000e+00> : vector<8xf32>
    %43 = vector.multi_reduction <add>, %42, %cst_14 [1] : vector<8x8xf32> to vector<8xf32>
    %44 = vector.shape_cast %43 : vector<8xf32> to vector<8x1xf32>
    %45 = tpu.reciprocal %44 {approx = true} : vector<8x1xf32> -> vector<8x1xf32>
    %46 = vector.broadcast %45 : vector<8x1xf32> to vector<8x8xf32>
    %47 = arith.mulf %42, %46 : vector<8x8xf32>
    %48 = arith.truncf %47 : vector<8x8xf32> to vector<8x8xbf16>
    %cst_15 = arith.constant dense<0.000000e+00> : vector<8x8xf32>
    %49 = tpu.matmul %48, %36, %cst_15 {dimension_numbers = #tpu.dot_dimension_numbers<[1], [0], [0], [1], [0, 0, 1, 1], [], []>} : vector<8x8xbf16>, vector<8x8xbf16>, vector<8x8xf32> -> vector<8x8xf32>
    %50 = arith.truncf %49 : vector<8x8xf32> to vector<8x8xbf16>
    %c0_16 = arith.constant 0 : index
    %c8 = arith.constant 8 : index
    %51 = vector.load %arg15[%c0_16, %c8] : memref<8x32xbf16, #tpu.memory_space<vmem>>, vector<8x8xbf16>
    tpu.vector_store %arg15[%c0_16, %c8], %50 {strides = array<i32>} : memref<8x32xbf16, #tpu.memory_space<vmem>>, vector<8x8xbf16>,
    %52 = vector.extract_strided_slice %11 {offsets = [0, 16], sizes = [8, 8], strides = [1, 1]} : vector<8x32xbf16> to vector<8x8xbf16>
    %53 = vector.extract_strided_slice %13 {offsets = [0, 16], sizes = [8, 8], strides = [1, 1]} : vector<8x32xbf16> to vector<8x8xbf16>
    %54 = vector.extract_strided_slice %15 {offsets = [0, 16], sizes = [8, 8], strides = [1, 1]} : vector<8x32xbf16> to vector<8x8xbf16>
    %cst_17 = arith.constant dense<0.000000e+00> : vector<8x8xf32>
    %55 = tpu.matmul %52, %53, %cst_17 {dimension_numbers = #tpu.dot_dimension_numbers<[1], [1], [0], [0], [0, 0, 1, 0], [], []>} : vector<8x8xbf16>, vector<8x8xbf16>, vector<8x8xf32> -> vector<8x8xf32>
    %cst_18 = arith.constant dense<0xFF800000> : vector<8xf32>
    %56 = vector.multi_reduction <maximumf>, %55, %cst_18 [1] : vector<8x8xf32> to vector<8xf32>
    %57 = vector.shape_cast %56 : vector<8xf32> to vector<8x1xf32>
    %58 = vector.broadcast %57 : vector<8x1xf32> to vector<8x8xf32>
    %59 = arith.subf %55, %58 : vector<8x8xf32>
    %60 = math.exp %59 : vector<8x8xf32>
    %cst_19 = arith.constant dense<0.000000e+00> : vector<8xf32>
    %61 = vector.multi_reduction <add>, %60, %cst_19 [1] : vector<8x8xf32> to vector<8xf32>
    %62 = vector.shape_cast %61 : vector<8xf32> to vector<8x1xf32>
    %63 = tpu.reciprocal %62 {approx = true} : vector<8x1xf32> -> vector<8x1xf32>
    %64 = vector.broadcast %63 : vector<8x1xf32> to vector<8x8xf32>
    %65 = arith.mulf %60, %64 : vector<8x8xf32>
    %66 = arith.truncf %65 : vector<8x8xf32> to vector<8x8xbf16>
    %cst_20 = arith.constant dense<0.000000e+00> : vector<8x8xf32>
    %67 = tpu.matmul %66, %54, %cst_20 {dimension_numbers = #tpu.dot_dimension_numbers<[1], [0], [0], [1], [0, 0, 1, 1], [], []>} : vector<8x8xbf16>, vector<8x8xbf16>, vector<8x8xf32> -> vector<8x8xf32>
    %68 = arith.truncf %67 : vector<8x8xf32> to vector<8x8xbf16>
    %c0_21 = arith.constant 0 : index
    %c16 = arith.constant 16 : index
    %69 = vector.load %arg15[%c0_21, %c16] : memref<8x32xbf16, #tpu.memory_space<vmem>>, vector<8x8xbf16>
    tpu.vector_store %arg15[%c0_21, %c16], %68 {strides = array<i32>} : memref<8x32xbf16, #tpu.memory_space<vmem>>, vector<8x8xbf16>,
    %70 = vector.extract_strided_slice %11 {offsets = [0, 24], sizes = [8, 8], strides = [1, 1]} : vector<8x32xbf16> to vector<8x8xbf16>
    %71 = vector.extract_strided_slice %13 {offsets = [0, 24], sizes = [8, 8], strides = [1, 1]} : vector<8x32xbf16> to vector<8x8xbf16>
    %72 = vector.extract_strided_slice %15 {offsets = [0, 24], sizes = [8, 8], strides = [1, 1]} : vector<8x32xbf16> to vector<8x8xbf16>
    %cst_22 = arith.constant dense<0.000000e+00> : vector<8x8xf32>
    %73 = tpu.matmul %70, %71, %cst_22 {dimension_numbers = #tpu.dot_dimension_numbers<[1], [1], [0], [0], [0, 0, 1, 0], [], []>} : vector<8x8xbf16>, vector<8x8xbf16>, vector<8x8xf32> -> vector<8x8xf32>
    %cst_23 = arith.constant dense<0xFF800000> : vector<8xf32>
    %74 = vector.multi_reduction <maximumf>, %73, %cst_23 [1] : vector<8x8xf32> to vector<8xf32>
    %75 = vector.shape_cast %74 : vector<8xf32> to vector<8x1xf32>
    %76 = vector.broadcast %75 : vector<8x1xf32> to vector<8x8xf32>
    %77 = arith.subf %73, %76 : vector<8x8xf32>
    %78 = math.exp %77 : vector<8x8xf32>
    %cst_24 = arith.constant dense<0.000000e+00> : vector<8xf32>
    %79 = vector.multi_reduction <add>, %78, %cst_24 [1] : vector<8x8xf32> to vector<8xf32>
    %80 = vector.shape_cast %79 : vector<8xf32> to vector<8x1xf32>
    %81 = tpu.reciprocal %80 {approx = true} : vector<8x1xf32> -> vector<8x1xf32>
    %82 = vector.broadcast %81 : vector<8x1xf32> to vector<8x8xf32>
    %83 = arith.mulf %78, %82 : vector<8x8xf32>
    %84 = arith.truncf %83 : vector<8x8xf32> to vector<8x8xbf16>
    %cst_25 = arith.constant dense<0.000000e+00> : vector<8x8xf32>
    %85 = tpu.matmul %84, %72, %cst_25 {dimension_numbers = #tpu.dot_dimension_numbers<[1], [0], [0], [1], [0, 0, 1, 1], [], []>} : vector<8x8xbf16>, vector<8x8xbf16>, vector<8x8xf32> -> vector<8x8xf32>
    %86 = arith.truncf %85 : vector<8x8xf32> to vector<8x8xbf16>
    %c0_26 = arith.constant 0 : index
    %c24 = arith.constant 24 : index
    %87 = vector.load %arg15[%c0_26, %c24] : memref<8x32xbf16, #tpu.memory_space<vmem>>, vector<8x8xbf16>
    tpu.vector_store %arg15[%c0_26, %c24], %86 {strides = array<i32>} : memref<8x32xbf16, #tpu.memory_space<vmem>>, vector<8x8xbf16>,
    %c0_27 = arith.constant 0 : index
    %c0_28 = arith.constant 0 : index
    %88 = vector.load %arg15[%c0_27, %c0_28] : memref<8x32xbf16, #tpu.memory_space<vmem>>, vector<8x32xbf16>
    %c0_29 = arith.constant 0 : index
    %c0_30 = arith.constant 0 : index
    %89 = vector.load %arg4[%c0_29, %c0_30] : memref<32x32xbf16, #tpu.memory_space<vmem>>, vector<32x32xbf16>
    %cst_31 = arith.constant dense<0.000000e+00> : vector<8x32xf32>
    %90 = tpu.matmul %88, %89, %cst_31 {dimension_numbers = #tpu.dot_dimension_numbers<[1], [0], [0], [1], [0, 0, 1, 1], [], []>} : vector<8x32xbf16>, vector<32x32xbf16>, vector<8x32xf32> -> vector<8x32xf32>
    %c0_32 = arith.constant 0 : index
    %c0_33 = arith.constant 0 : index
    %91 = vector.load %arg5[%c0_32, %c0_33] : memref<1x32xf32, #tpu.memory_space<vmem>>, vector<1x32xf32>
    %92 = vector.shape_cast %91 : vector<1x32xf32> to vector<32xf32>
    %93 = vector.shape_cast %92 : vector<32xf32> to vector<1x32xf32>
    %94 = vector.broadcast %93 : vector<1x32xf32> to vector<8x32xf32>
    %95 = arith.addf %90, %94 : vector<8x32xf32>
    %96 = arith.addf %95, %2 : vector<8x32xf32>
    %c0_34 = arith.constant 0 : index
    %c0_35 = arith.constant 0 : index
    %97 = vector.load %arg6[%c0_34, %c0_35] : memref<1x32xf32, #tpu.memory_space<vmem>>, vector<1x32xf32>
    %98 = vector.shape_cast %97 : vector<1x32xf32> to vector<32xf32>
    %c0_36 = arith.constant 0 : index
    %c0_37 = arith.constant 0 : index
    %99 = vector.load %arg7[%c0_36, %c0_37] : memref<1x32xf32, #tpu.memory_space<vmem>>, vector<1x32xf32>
    %100 = vector.shape_cast %99 : vector<1x32xf32> to vector<32xf32>
    %cst_38 = arith.constant dense<0.000000e+00> : vector<8xf32>
    %101 = vector.multi_reduction <add>, %96, %cst_38 [1] : vector<8x32xf32> to vector<8xf32>
    %102 = vector.shape_cast %101 : vector<8xf32> to vector<8x1xf32>
    %cst_39 = arith.constant 3.200000e+01 : f32
    %103 = vector.broadcast %cst_39 : f32 to vector<8x1xf32>
    %104 = arith.divf %102, %103 : vector<8x1xf32>
    %105 = vector.broadcast %104 : vector<8x1xf32> to vector<8x32xf32>
    %106 = arith.subf %96, %105 : vector<8x32xf32>
    %107 = arith.mulf %106, %106 : vector<8x32xf32>
    %cst_40 = arith.constant dense<0.000000e+00> : vector<8xf32>
    %108 = vector.multi_reduction <add>, %107, %cst_40 [1] : vector<8x32xf32> to vector<8xf32>
    %109 = vector.shape_cast %108 : vector<8xf32> to vector<8x1xf32>
    %cst_41 = arith.constant 3.200000e+01 : f32
    %110 = vector.broadcast %cst_41 : f32 to vector<8x1xf32>
    %111 = arith.divf %109, %110 : vector<8x1xf32>
    %112 = vector.broadcast %104 : vector<8x1xf32> to vector<8x32xf32>
    %113 = arith.subf %96, %112 : vector<8x32xf32>
    %cst_42 = arith.constant 9.99999996E-13 : f32
    %114 = vector.broadcast %cst_42 : f32 to vector<8x1xf32>
    %115 = arith.addf %111, %114 : vector<8x1xf32>
    %116 = math.rsqrt %115 : vector<8x1xf32>
    %117 = vector.broadcast %116 : vector<8x1xf32> to vector<8x32xf32>
    %118 = arith.mulf %113, %117 : vector<8x32xf32>
    %119 = vector.shape_cast %98 : vector<32xf32> to vector<1x32xf32>
    %120 = vector.broadcast %119 : vector<1x32xf32> to vector<8x32xf32>
    %121 = arith.mulf %118, %120 : vector<8x32xf32>
    %122 = vector.shape_cast %100 : vector<32xf32> to vector<1x32xf32>
    %123 = vector.broadcast %122 : vector<1x32xf32> to vector<8x32xf32>
    %124 = arith.addf %121, %123 : vector<8x32xf32>
    %125 = arith.truncf %124 : vector<8x32xf32> to vector<8x32xbf16>
    %c0_43 = arith.constant 0 : index
    %c0_44 = arith.constant 0 : index
    %126 = vector.load %arg8[%c0_43, %c0_44] : memref<32x128xbf16, #tpu.memory_space<vmem>>, vector<32x128xbf16>
    %cst_45 = arith.constant dense<0.000000e+00> : vector<8x128xf32>
    %127 = tpu.matmul %125, %126, %cst_45 {dimension_numbers = #tpu.dot_dimension_numbers<[1], [0], [0], [1], [0, 0, 1, 1], [], []>} : vector<8x32xbf16>, vector<32x128xbf16>, vector<8x128xf32> -> vector<8x128xf32>
    %c0_46 = arith.constant 0 : index
    %c0_47 = arith.constant 0 : index
    %128 = vector.load %arg9[%c0_46, %c0_47] : memref<1x128xf32, #tpu.memory_space<vmem>>, vector<1x128xf32>
    %129 = vector.shape_cast %128 : vector<1x128xf32> to vector<128xf32>
    %130 = vector.shape_cast %129 : vector<128xf32> to vector<1x128xf32>
    %131 = vector.broadcast %130 : vector<1x128xf32> to vector<8x128xf32>
    %132 = arith.addf %127, %131 : vector<8x128xf32>
    %133 = arith.mulf %132, %132 : vector<8x128xf32>
    %134 = arith.mulf %132, %133 : vector<8x128xf32>
    %cst_48 = arith.constant 4.471500e-02 : f32
    %135 = vector.broadcast %cst_48 : f32 to vector<8x128xf32>
    %136 = arith.mulf %135, %134 : vector<8x128xf32>
    %137 = arith.addf %132, %136 : vector<8x128xf32>
    %cst_49 = arith.constant 0.797884583 : f32
    %138 = vector.broadcast %cst_49 : f32 to vector<8x128xf32>
    %139 = arith.mulf %138, %137 : vector<8x128xf32>
    %140 = math.tanh %139 : vector<8x128xf32>
    %cst_50 = arith.constant 1.000000e+00 : f32
    %141 = vector.broadcast %cst_50 : f32 to vector<8x128xf32>
    %142 = arith.addf %141, %140 : vector<8x128xf32>
    %cst_51 = arith.constant 5.000000e-01 : f32
    %143 = vector.broadcast %cst_51 : f32 to vector<8x128xf32>
    %144 = arith.mulf %143, %142 : vector<8x128xf32>
    %145 = arith.mulf %132, %144 : vector<8x128xf32>
    %146 = arith.truncf %145 : vector<8x128xf32> to vector<8x128xbf16>
    %c0_52 = arith.constant 0 : index
    %c0_53 = arith.constant 0 : index
    %147 = vector.load %arg10[%c0_52, %c0_53] : memref<128x32xbf16, #tpu.memory_space<vmem>>, vector<128x32xbf16>
    %cst_54 = arith.constant dense<0.000000e+00> : vector<8x32xf32>
    %148 = tpu.matmul %146, %147, %cst_54 {dimension_numbers = #tpu.dot_dimension_numbers<[1], [0], [0], [1], [0, 0, 1, 1], [], []>} : vector<8x128xbf16>, vector<128x32xbf16>, vector<8x32xf32> -> vector<8x32xf32>
    %c0_55 = arith.constant 0 : index
    %c0_56 = arith.constant 0 : index
    %149 = vector.load %arg11[%c0_55, %c0_56] : memref<1x32xf32, #tpu.memory_space<vmem>>, vector<1x32xf32>
    %150 = vector.shape_cast %149 : vector<1x32xf32> to vector<32xf32>
    %151 = vector.shape_cast %150 : vector<32xf32> to vector<1x32xf32>
    %152 = vector.broadcast %151 : vector<1x32xf32> to vector<8x32xf32>
    %153 = arith.addf %148, %152 : vector<8x32xf32>
    %154 = arith.addf %153, %124 : vector<8x32xf32>
    %c0_57 = arith.constant 0 : index
    %c0_58 = arith.constant 0 : index
    %155 = vector.load %arg12[%c0_57, %c0_58] : memref<1x32xf32, #tpu.memory_space<vmem>>, vector<1x32xf32>
    %156 = vector.shape_cast %155 : vector<1x32xf32> to vector<32xf32>
    %c0_59 = arith.constant 0 : index
    %c0_60 = arith.constant 0 : index
    %157 = vector.load %arg13[%c0_59, %c0_60] : memref<1x32xf32, #tpu.memory_space<vmem>>, vector<1x32xf32>
    %158 = vector.shape_cast %157 : vector<1x32xf32> to vector<32xf32>
    %cst_61 = arith.constant dense<0.000000e+00> : vector<8xf32>
    %159 = vector.multi_reduction <add>, %154, %cst_61 [1] : vector<8x32xf32> to vector<8xf32>
    %160 = vector.shape_cast %159 : vector<8xf32> to vector<8x1xf32>
    %cst_62 = arith.constant 3.200000e+01 : f32
    %161 = vector.broadcast %cst_62 : f32 to vector<8x1xf32>
    %162 = arith.divf %160, %161 : vector<8x1xf32>
    %163 = vector.broadcast %162 : vector<8x1xf32> to vector<8x32xf32>
    %164 = arith.subf %154, %163 : vector<8x32xf32>
    %165 = arith.mulf %164, %164 : vector<8x32xf32>
    %cst_63 = arith.constant dense<0.000000e+00> : vector<8xf32>
    %166 = vector.multi_reduction <add>, %165, %cst_63 [1] : vector<8x32xf32> to vector<8xf32>
    %167 = vector.shape_cast %166 : vector<8xf32> to vector<8x1xf32>
    %cst_64 = arith.constant 3.200000e+01 : f32
    %168 = vector.broadcast %cst_64 : f32 to vector<8x1xf32>
    %169 = arith.divf %167, %168 : vector<8x1xf32>
    %170 = vector.broadcast %162 : vector<8x1xf32> to vector<8x32xf32>
    %171 = arith.subf %154, %170 : vector<8x32xf32>
    %cst_65 = arith.constant 9.99999996E-13 : f32
    %172 = vector.broadcast %cst_65 : f32 to vector<8x1xf32>
    %173 = arith.addf %169, %172 : vector<8x1xf32>
    %174 = math.rsqrt %173 : vector<8x1xf32>
    %175 = vector.broadcast %174 : vector<8x1xf32> to vector<8x32xf32>
    %176 = arith.mulf %171, %175 : vector<8x32xf32>
    %177 = vector.shape_cast %156 : vector<32xf32> to vector<1x32xf32>
    %178 = vector.broadcast %177 : vector<1x32xf32> to vector<8x32xf32>
    %179 = arith.mulf %176, %178 : vector<8x32xf32>
    %180 = vector.shape_cast %158 : vector<32xf32> to vector<1x32xf32>
    %181 = vector.broadcast %180 : vector<1x32xf32> to vector<8x32xf32>
    %182 = arith.addf %179, %181 : vector<8x32xf32>
    %183 = arith.truncf %182 : vector<8x32xf32> to vector<8x32xbf16>
    %c0_66 = arith.constant 0 : index
    %c0_67 = arith.constant 0 : index
    %c0_68 = arith.constant 0 : index
    %184 = vector.load %arg14[%c0_66, %c0_67, %c0_68] : memref<1x8x32xbf16, #tpu.memory_space<vmem>>, vector<1x8x32xbf16>
    %185 = vector.shape_cast %184 : vector<1x8x32xbf16> to vector<8x32xbf16>
    %186 = vector.shape_cast %183 : vector<8x32xbf16> to vector<1x8x32xbf16>
    tpu.vector_store %arg14[%c0_66, %c0_67, %c0_68], %186 {strides = array<i32>} : memref<1x8x32xbf16, #tpu.memory_space<vmem>>, vector<1x8x32xbf16>,
    return
  }
  func.func @transform_0(%arg0: i32) -> (i32, i32, i32) {
    %c0_i32 = arith.constant 0 : i32
    %c0_i32_0 = arith.constant 0 : i32
    %c0_i32_1 = arith.constant 0 : i32
    return %arg0, %c0_i32, %c0_i32_0 : i32, i32, i32
  }
  func.func @transform_1(%arg0: i32) -> (i32, i32) {
    %c0_i32 = arith.constant 0 : i32
    %c0_i32_0 = arith.constant 0 : i32
    %c0_i32_1 = arith.constant 0 : i32
    return %c0_i32, %c0_i32_0 : i32, i32
  }
  func.func @transform_2(%arg0: i32) -> (i32, i32) {
    %c0_i32 = arith.constant 0 : i32
    %c0_i32_0 = arith.constant 0 : i32
    %c0_i32_1 = arith.constant 0 : i32
    return %c0_i32, %c0_i32_0 : i32, i32
  }
  func.func @transform_3(%arg0: i32) -> (i32, i32) {
    %c0_i32 = arith.constant 0 : i32
    %c0_i32_0 = arith.constant 0 : i32
    %c0_i32_1 = arith.constant 0 : i32
    return %c0_i32, %c0_i32_0 : i32, i32
  }
  func.func @transform_4(%arg0: i32) -> (i32, i32) {
    %c0_i32 = arith.constant 0 : i32
    %c0_i32_0 = arith.constant 0 : i32
    %c0_i32_1 = arith.constant 0 : i32
    return %c0_i32, %c0_i32_0 : i32, i32
  }
  func.func @transform_5(%arg0: i32) -> (i32, i32) {
    %c0_i32 = arith.constant 0 : i32
    %c0_i32_0 = arith.constant 0 : i32
    %c0_i32_1 = arith.constant 0 : i32
    return %c0_i32, %c0_i32_0 : i32, i32
  }
  func.func @transform_6(%arg0: i32) -> (i32, i32) {
    %c0_i32 = arith.constant 0 : i32
    %c0_i32_0 = arith.constant 0 : i32
    %c0_i32_1 = arith.constant 0 : i32
    return %c0_i32, %c0_i32_0 : i32, i32
  }
  func.func @transform_7(%arg0: i32) -> (i32, i32) {
    %c0_i32 = arith.constant 0 : i32
    %c0_i32_0 = arith.constant 0 : i32
    %c0_i32_1 = arith.constant 0 : i32
    return %c0_i32, %c0_i32_0 : i32, i32
  }
  func.func @transform_8(%arg0: i32) -> (i32, i32) {
    %c0_i32 = arith.constant 0 : i32
    %c0_i32_0 = arith.constant 0 : i32
    %c0_i32_1 = arith.constant 0 : i32
    return %c0_i32, %c0_i32_0 : i32, i32
  }
  func.func @transform_9(%arg0: i32) -> (i32, i32) {
    %c0_i32 = arith.constant 0 : i32
    %c0_i32_0 = arith.constant 0 : i32
    %c0_i32_1 = arith.constant 0 : i32
    return %c0_i32, %c0_i32_0 : i32, i32
  }
  func.func @transform_10(%arg0: i32) -> (i32, i32) {
    %c0_i32 = arith.constant 0 : i32
    %c0_i32_0 = arith.constant 0 : i32
    %c0_i32_1 = arith.constant 0 : i32
    return %c0_i32, %c0_i32_0 : i32, i32
  }
  func.func @transform_11(%arg0: i32) -> (i32, i32) {
    %c0_i32 = arith.constant 0 : i32
    %c0_i32_0 = arith.constant 0 : i32
    %c0_i32_1 = arith.constant 0 : i32
    return %c0_i32, %c0_i32_0 : i32, i32
  }
  func.func @transform_12(%arg0: i32) -> (i32, i32) {
    %c0_i32 = arith.constant 0 : i32
    %c0_i32_0 = arith.constant 0 : i32
    %c0_i32_1 = arith.constant 0 : i32
    return %c0_i32, %c0_i32_0 : i32, i32
  }
  func.func @transform_13(%arg0: i32) -> (i32, i32, i32) {
    %c0_i32 = arith.constant 0 : i32
    %c0_i32_0 = arith.constant 0 : i32
    %c0_i32_1 = arith.constant 0 : i32
    return %arg0, %c0_i32, %c0_i32_0 : i32, i32, i32
  }
}

</mosaic_0001>

<bundles_post_ra>
// kernel: tpu_custom_call.1
= control target key start
LH: loop header
LB: loop body
LE: loop exit
PB: predicated region body
PF: predicated region fallthrough
CT: control target
= control target key end

     0   :  { %s1575_s0 = inlined_call_operand.vmem [shape: bf16[2,8,32], index: 0, kind: input, shape index: {}]   ;;  %s1576_s1 = inlined_call_operand.vmem [shape: bf16[32,96], index: 1, kind: input, shape index: {}]   ;;  %s1577_s2 = inlined_call_operand.vmem [shape: f32[1,96], index: 2, kind: input, shape index: {}]   ;;  %s1578_s3 = inlined_call_operand.vmem [shape: bf16[32,32], index: 3, kind: input, shape index: {}]   ;;  %s1579_s4 = inlined_call_operand.vmem [shape: f32[1,32], index: 4, kind: input, shape index: {}]   ;;  %s1580_s5 = inlined_call_operand.vmem [shape: f32[1,32], index: 5, kind: input, shape index: {}]   ;;  %s1581_s6 = inlined_call_operand.vmem [shape: f32[1,32], index: 6, kind: input, shape index: {}]   ;;  %s1582_s7 = inlined_call_operand.vmem [shape: bf16[32,128], index: 7, kind: input, shape index: {}]   ;;  %s1583_s8 = inlined_call_operand.vmem [shape: f32[1,128], index: 8, kind: input, shape index: {}]   ;;  %s1584_s9 = inlined_call_operand.vmem [shape: bf16[128,32], index: 9, kind: input, shape index: {}]   ;;  %s1585_s10 = inlined_call_operand.vmem [shape: f32[1,32], index: 10, kind: input, shape index: {}]   ;;  %s1586_s11 = inlined_call_operand.vmem [shape: f32[1,32], index: 11, kind: input, shape index: {}]   ;;  %s1587_s12 = inlined_call_operand.vmem [shape: f32[1,32], index: 12, kind: input, shape index: {}]   ;;  %s1588_s13 = inlined_call_operand.hbm [shape: bf16[2,8,32], index: 13, kind: output, shape index: {}]  }
   0x1   :  { %1589 = sst [smem:[#allocation7_spill]] %s1575_s0 }
   0x2   :  { %1590 = sst [smem:[#allocation8_spill]] %s1576_s1 }
   0x3   :  { %1591 = sst [smem:[#allocation9_spill]] %s1577_s2 }
   0x4   :  { %18 = vsyncpa [#allocation4], 0 }
   0x5   :  { %20 = vsyncpa [#allocation4 + $0x1], 0  ;;  %s1370_s25 = smov 0   ;;  %s1372_s26 = smov 0  }
   0x6   :  { %s1374_s27 = smov 0   ;;  %s1376_s28 = smov 0  }
   0x7 LB: > { %s1391_s29 = sadd.s32 4294967295, %s1283_s28   ;;  %s1044_s30 = sadd.s32 4294967294, %s1283_s28   ;;  %s1283_s28 = sphi %s1376_s28, %s1602_s28   ;;  %s1279_s27 = sphi %s1374_s27, %s1601_s27   ;;  %s1275_s26 = sphi %s1372_s26, %s1600_s26   ;;  %s1271_s25 = sphi %s1370_s25, %s1599_s25  }
   0x8   : > { %s1395_s14 = sadd.s32 1, %s1283_s28   ;;  %s311_s15 = sadd.s32 1, %s1279_s27 }
   0x9   : > { %s308_s16 = ssub.s32 %s1283_s28, %s1395_s14  ;;  %p321_p0 = scmp.ne.s32.totalorder %s1279_s27, %s1275_s26 }
   0xa   : > { %p309_p1 = scmp.eq.s32.totalorder %s308_s16, 0  ;;  %p322_p2 = scmp.eq.s32.totalorder %s1391_s29, 1 }
   0xb   : > { %p327_p3 = scmp.ne.s32.totalorder %s1275_s26, %s1271_s25  ;;  %p328_p4 = scmp.eq.s32.totalorder %s1044_s30, 1 }
   0xc   : > { %s1406_s17 = scalar_select %p309_p1, %s1279_s27, %s311_s15  }
   0xd   : > { %p1408_p5 = por %p322_p2, %p321_p0  ;;  %p1412_p6 = por %p328_p4, %p327_p3 }
   0xe   : > { %1592 = sst [smem:[#allocation6_spill]] %s1406_s17  ;;  %p1047_p7 = scmp.ge.s32.totalorder %s1283_s28, 1 }
   0xf   : > { %p389_p8 = scmp.lt.s32.totalorder %s1283_s28, 3 }
  0x11   : > { %p390_p9 = pnand %p1047_p7, %p389_p8 }
  0x12   : > { %s1595_s1 = sld [smem:[#allocation8_spill]] (!%p390_p9)  ;;  %p432_p10 = scmp.lt.s32.totalorder (!%p390_p9), %s1391_s29, 1 }
  0x13   : > { %393 = sbr.rel (%p390_p9) target bundleno = 2327 (0x917), region = 72  ;;  %s1596_s0 = sld [smem:[#allocation7_spill]] (!%p390_p9) }
  0x14   : > { %s1597_s2 = sld [smem:[#allocation9_spill]] (!%p390_p9)  ;;  %s1285_s22 = smov (!%p390_p9), 88  }
  0x15   : > { %s1287_s23 = smov (!%p390_p9), 120   ;;  %s1290_s15 = smov (!%p390_p9), 80  }
  0x16   : > { %s1291_s16 = smov (!%p390_p9), 64   ;;  %s1292_s20 = smov (!%p390_p9), 112  }
  0x17   : > { %s1293_s21 = smov (!%p390_p9), 56  }
  0x18   : > { %v1122_v0 = vld [vmem:[%s1595_s1 + $0x8] sm:$0xff]  ;;  %v1121_v1 = vld [vmem:[%s1595_s1] sm:$0xff]  ;;  %s433_s24 = scalar_select %p432_p10, %s1391_s29, 1  ;;  %vm459_vm0 = vcmask 261120   ;;  %vm482_vm1 = vcmask 64512   ;;  %vm519_vm2 = vcmask 1043456  }
  0x19   : > { %469 = vmatpush.bf16.msra.mxu0 %v1122_v0  ;;  %vm537_vm3 = vcmask 60416   ;;  %vm600_vm4 = vcmask 126016   ;;  %vm663_vm5 = vcmask 191616   ;;  %vm726_vm6 = vcmask 257216  }
  0x1a   : > { %s1049_s30 = sshll.u32 %s433_s24, 2  ;;  %v1189_v3 = vld [vmem:[%s1597_s2] ss:$0 sm:$0xff]  ;;  %s1288_s24 = smov 72   ;;  %vm967_vm14 = vcmask 257024  }
  0x1b   : > { %s435_s17 = scalar_lea.vmem %s1596_s0, %s1049_s30  ;;  %s1289_s30 = smov 104  }
  0x1c   : > { %v1429_v2 = vld [vmem:[%s435_s17] sm:$0xf]  ;;  %s1286_s17 = smov 96  }
  0x1d   : > { %470 = vmatpush.bf16.msra.mxu0 %v1121_v1 }
  0x20   : > { %1058 = vmatmul.msk.bf16.vlgmr.msra.gmra.mxu0 %vm459_vm0, %v1429_v2 }
  0x9d   : > { %v472_v4 = vpop.f32.mrf.mxu0 }
  0x9e   : > { %v473_v5 = vadd.f32 %v1189_v3, %v472_v4 }
  0xa0   : > { %v476_v6 = vpack.c.bf16 %v473_v5, %v473_v5 }
  0xa2   : > { %v478_v7 = vunpack.c.l.b16 %v476_v6 }
  0xa4   : > { %v1436_v8 = vpack.c.b16 %v478_v7, %v478_v7 }
  0xa5   : > { %v474_v9 = vpop.f32.mrf.mxu0 }
  0xa6   : > { %541 = vrot.lane.b32.xlu2 %v1436_v8, %s1285_s22  ;;  %480 = vrot.lane.b32.xlu0 %v1436_v8, %s1286_s17  ;;  %s1294_s22 = smov 48   ;;  %s1295_s17 = smov 40  }
  0xae   : > { %539 = vrot.lane.b32.xlu2 %v1436_v8, %s1287_s23  ;;  %s1296_s23 = smov 16  }
  0xb6   : > { %667 = vrot.lane.b32.xlu2 %v1436_v8, %s1288_s24  ;;  %s1297_s24 = smov 8  }
  0xbe   : > { %665 = vrot.lane.b32.xlu2 %v1436_v8, %s1289_s30  ;;  %s1298_s30 = smov 24  }
  0xc6   : > { %604 = vrot.lane.b32.xlu2 %v1436_v8, %s1290_s15 }
 0x100   : > { %v542_v10 = vpop.permute.xlu2 %541 }
 0x101   : > { %v547_v35 = vsel %vm482_vm1, %v542_v10, 0 }
 0x108   : > { %v540_v11 = vpop.permute.xlu2 %539 }
 0x110   : > { %v668_v12 = vpop.permute.xlu2 %667 }
 0x111   : > { %v673_v13 = vsel %vm482_vm1, %v668_v12, 0 }
 0x112   : > { %682 = vmatpush.bf16.xpose.msra.mxu3 %v673_v13 }
 0x118   : > { %v666_v14 = vpop.permute.xlu2 %665  ;;  %v481_v15 = vpop.permute.xlu0 %480 }
 0x119   : > { %1065 = vmatmul.msk.bf16.vlgmr.msra.gmra.mxu3 %vm482_vm1, %v666_v14  ;;  %v487_v16 = vsel %vm482_vm1, %v481_v15, 0 }
 0x11a   : > { %496 = vmatpush.bf16.xpose.msra.mxu1 %v487_v16 }
 0x120   : > { %v605_v17 = vpop.permute.xlu2 %604 }
 0x121   : > { %1059 = vmatmul.msk.bf16.vlgmr.msra.gmra.mxu1 %vm482_vm1, %v476_v6  ;;  %v610_v18 = vsel %vm482_vm1, %v605_v17, 0 }
 0x122   : > { %619 = vmatpush.bf16.xpose.msrb.mxu0 %v610_v18 }
 0x19c   : > { %v684_v19 = vpop.f32.mrf.mxu3 }
 0x19d   : > { %v688_v29 = vsel %vm482_vm1, %v684_v19, -inf }
 0x19e   : > { %v498_v20 = vpop.f32.mrf.mxu1 }
 0x19f   : > { %v502_v21 = vsel %vm482_vm1, %v498_v20, -inf }
 0x1a0   : > { %503 = vmax.xlane.f32.xlu0 %v502_v21 }
 0x1a4   : > { %v686_v22 = vpop.f32.mrf.mxu3 }
 0x1a6   : > { %v500_v23 = vpop.f32.mrf.mxu1 }
 0x213   : > { %v504_v24 = vpop.xlane.xlu0 %503 }
 0x214   : > { %v505_v25 = vsub.f32 %v498_v20, %v504_v24 }
 0x216   : > { %v506_v26 = vmul.f32 1.442695, %v505_v25 }
 0x218   : > { %1197 = vpow2.f32 %v506_v26  ;;  %v1124_v26 = vld [vmem:[%s1578_s3 + $0x8] sm:$0xff] }
 0x219   : > { %758 = vmatpush.bf16.msra.mxu0 %v1124_v26 }
 0x21e   : > { %v1198_v27 = vpop.eup %1197 }
 0x21f   : > { %v508_v28 = vsel %vm482_vm1, %v1198_v27, 0.0 }
 0x220   : > { %509 = vadd.xlane.f32.xlu1 %v508_v28 }
 0x239   : > { %514 = vrot.lane.b32.xlu1 %v1436_v8, %s1291_s16 }
 0x241   : > { %602 = vrot.lane.b32.xlu1 %v1436_v8, %s1292_s20 }
 0x26b   : > { %689 = vmax.xlane.f32.xlu1 %v688_v29 }
 0x293   : > { %v510_v30 = vpop.xlane.xlu1 %509 }
 0x294   : > { %1199 = vrcp.f32 %v510_v30 }
 0x29a   : > { %v1200_v31 = vpop.eup %1199 }
 0x29b   : > { %v512_v32 = vmul.f32 %v1200_v31, %v1198_v27  ;;  %v1123_v27 = vld [vmem:[%s1578_s3] sm:$0xff] }
 0x29c   : > { %759 = vmatpush.bf16.msra.mxu0 %v1123_v27  ;;  %v1194_v27 = vld [vmem:[%s1585_s10] ss:$0 sm:$0xff] }
 0x29d   : > { %v513_v36 = vpack.c.bf16 %v512_v32, %v512_v32  ;;  %v1190_v32 = vld [vmem:[%s1579_s4] ss:$0 sm:$0xff] }
 0x2ab   : > { %v515_v33 = vpop.permute.xlu1 %514 }
 0x2ac   : > { %v521_v34 = vsel %vm519_vm2, %v515_v33, 0  ;;  %v438_v33 = vunpack.c.l.bf16 %v1429_v2 }
 0x2ad   : > { %530 = vmatpush.bf16.msra.mxu2 %v521_v34 }
 0x2b0   : > { %1060 = vmatmul.msk.bf16.vlgmr.msra.gmra.mxu2 %vm482_vm1, %v513_v36 }
 0x2b1   : > { %556 = vmatpush.bf16.xpose.msrb.mxu2 %v547_v35 }
 0x2b3   : > { %v603_v37 = vpop.permute.xlu1 %602 }
 0x2b4   : > { %1063 = vmatmul.msk.bf16.vlgmr.msrb.gmra.mxu0 %vm482_vm1, %v603_v37 }
 0x2c0   : > { %1061 = vmatmul.msk.bf16.vlgmr.msrb.gmra.mxu2 %vm482_vm1, %v540_v11 }
 0x2de   : > { %v690_v42 = vpop.xlane.xlu1 %689 }
 0x2df   : > { %v691_v44 = vsub.f32 %v684_v19, %v690_v42 }
 0x2e1   : > { %v692_v46 = vmul.f32 1.442695, %v691_v44 }
 0x2e3   : > { %1201 = vpow2.f32 %v692_v46 }
 0x2e9   : > { %v1202_v49 = vpop.eup %1201 }
 0x2ea   : > { %v694_v51 = vsel %vm482_vm1, %v1202_v49, 0.0 }
 0x331   : > { %v621_v38 = vpop.f32.mrf.mxu0 }
 0x332   : > { %v625_v39 = vsel %vm482_vm1, %v621_v38, -inf }
 0x333   : > { %v532_v40 = vpop.f32.mrf.mxu2  ;;  %626 = vmax.xlane.f32.xlu0 %v625_v39  ;;  %v1299_v39 = vmov 32.0  }
 0x334   : > { %v536_v41 = vpack.c.bf16 %v532_v40, %v532_v40 }
 0x336   : > { %538 = vst.msk [vmem:[#allocation2] sm:$0xf] %vm537_vm3, %v536_v41 }
 0x339   : > { %v623_v43 = vpop.f32.mrf.mxu0 }
 0x33b   : > { %v534_v45 = vpop.f32.mrf.mxu2 }
 0x343   : > { %v558_v47 = vpop.f32.mrf.mxu2 }
 0x344   : > { %v562_v48 = vsel %vm482_vm1, %v558_v47, -inf }
 0x345   : > { %563 = vmax.xlane.f32.xlu2 %v562_v48 }
 0x347   : > { %574 = vrot.lane.b32.xlu0 %v1436_v8, %s1293_s21 }
 0x34b   : > { %v560_v50 = vpop.f32.mrf.mxu2 }
 0x34c   : > { %v1126_v50 = vld [vmem:[%s1582_s7 + $0x8] sm:$0xff] }
 0x34d   : > { %695 = vadd.xlane.f32.xlu2 %v694_v51  ;;  %v1125_v51 = vld [vmem:[%s1582_s7] sm:$0xff] }
 0x365   : > { %637 = vrot.lane.b32.xlu2 %v1436_v8, %s1294_s22 }
 0x3a6   : > { %v627_v52 = vpop.xlane.xlu0 %626 }
 0x3a7   : > { %v628_v53 = vsub.f32 %v621_v38, %v627_v52  ;;  %v1134_v52 = vld [vmem:[%s1584_s9 + $0x38] sm:$0xff] }
 0x3a8   : > { %920 = vmatpush.bf16.msrb.mxu3 %v1134_v52 }
 0x3a9   : > { %v629_v54 = vmul.f32 1.442695, %v628_v53 }
 0x3ab   : > { %1203 = vpow2.f32 %v629_v54 }
 0x3b1   : > { %v1204_v55 = vpop.eup %1203 }
 0x3b2   : > { %v631_v56 = vsel %vm482_vm1, %v1204_v55, 0.0 }
 0x3b3   : > { %632 = vadd.xlane.f32.xlu1 %v631_v56 }
 0x3b8   : > { %v564_v57 = vpop.xlane.xlu2 %563 }
 0x3b9   : > { %v565_v58 = vsub.f32 %v558_v47, %v564_v57  ;;  %v575_v59 = vpop.permute.xlu0 %574 }
 0x3ba   : > { %v580_v60 = vsel %vm519_vm2, %v575_v59, 0 }
 0x3bb   : > { %v566_v61 = vmul.f32 1.442695, %v565_v58  ;;  %589 = vmatpush.bf16.msra.mxu2 %v580_v60 }
 0x3bd   : > { %1205 = vpow2.f32 %v566_v61 }
 0x3c0   : > { %v696_v62 = vpop.xlane.xlu2 %695 }
 0x3c3   : > { %v1206_v63 = vpop.eup %1205 }
 0x3c4   : > { %v568_v0 = vsel %vm482_vm1, %v1206_v63, 0.0 }
 0x3c5   : > { %569 = vadd.xlane.f32.xlu0 %v568_v0  ;;  %v1192_v0 = vld [vmem:[%s1581_s6] ss:$0 sm:$0xff] }
 0x3c8   : > { %v638_v1 = vpop.permute.xlu2 %637 }
 0x3c9   : > { %v643_v3 = vsel %vm519_vm2, %v638_v1, 0 }
 0x3ca   : > { %652 = vmatpush.bf16.msrb.mxu1 %v643_v3 }
 0x3ce   : > { %835 = vmatpush.bf16.msra.mxu1 %v1126_v50 }
 0x3d2   : > { %836 = vmatpush.bf16.msra.mxu1 %v1125_v51 }
 0x3d9   : > { %700 = vrot.lane.b32.xlu0 %v1436_v8, %s1295_s17  ;;  %s429_s17 = sand.u32 1, %s1275_s26  }
 0x426   : > { %v633_v4 = vpop.xlane.xlu1 %632 }
 0x427   : > { %1207 = vrcp.f32 %v633_v4 }
 0x42d   : > { %v1208_v5 = vpop.eup %1207 }
 0x42e   : > { %v635_v6 = vmul.f32 %v1208_v5, %v1204_v55 }
 0x430   : > { %v636_v7 = vpack.c.bf16 %v635_v6, %v635_v6  ;;  %v1133_v6 = vld [vmem:[%s1584_s9 + $0x30] sm:$0xff] }
 0x431   : > { %921 = vmatpush.bf16.msrb.mxu3 %v1133_v6 }
 0x432   : > { %1064 = vmatmul.msk.bf16.vlgmr.msrb.gmra.mxu1 %vm482_vm1, %v636_v7  ;;  %v1132_v7 = vld [vmem:[%s1584_s9 + $0x28] sm:$0xff] }
 0x435   : > { %922 = vmatpush.bf16.msrb.mxu3 %v1132_v7 }
 0x438   : > { %v570_v9 = vpop.xlane.xlu0 %569 }
 0x439   : > { %1209 = vrcp.f32 %v570_v9  ;;  %v1131_v9 = vld [vmem:[%s1584_s9 + $0x20] sm:$0xff] }
 0x43a   : > { %1211 = vrcp.f32 %v696_v62  ;;  %v1191_v62 = vld [vmem:[%s1580_s5] ss:$0 sm:$0xff]  ;;  %923 = vmatpush.bf16.msrb.mxu3 %v1131_v9 }
 0x43b   : > { %1213 = vrcp.f32 %v1299_v39 }
 0x43f   : > { %v1210_v10 = vpop.eup %1209 }
 0x440   : > { %v572_v11 = vmul.f32 %v1210_v10, %v1206_v63  ;;  %v1212_v13 = vpop.eup %1211  ;;  %v1130_v10 = vld [vmem:[%s1584_s9 + $0x18] sm:$0xff] }
 0x441   : > { %v698_v8 = vmul.f32 %v1212_v13, %v1202_v49  ;;  %v1214_v40 = vpop.eup %1213  ;;  %924 = vmatpush.bf16.msrb.mxu3 %v1130_v10  ;;  %v1127_v13 = vld [vmem:[%s1584_s9] sm:$0xff] }
 0x442   : > { %v573_v12 = vpack.c.bf16 %v572_v11, %v572_v11  ;;  %v772_v41 = vmul.f32 32.0, %v1214_v40  ;;  %vm776_vm7 = vweird.f32 %v1214_v40  ;;  %v1129_v11 = vld [vmem:[%s1584_s9 + $0x10] sm:$0xff] }
 0x443   : > { %v699_v16 = vpack.c.bf16 %v698_v8, %v698_v8 }
 0x444   : > { %1062 = vmatmul.msk.bf16.vlgmr.msra.gmra.mxu2 %vm482_vm1, %v573_v12  ;;  %v773_v42 = vsub.f32 1.0, %v772_v41  ;;  %v1128_v12 = vld [vmem:[%s1584_s9 + $0x8] sm:$0xff] }
 0x445   : > { %925 = vmatpush.bf16.msrb.mxu3 %v1129_v11 }
 0x446   : > { %v774_v43 = vmul.f32 %v1214_v40, %v773_v42 }
 0x448   : > { %v775_v44 = vadd.f32 %v1214_v40, %v774_v43 }
 0x449   : > { %926 = vmatpush.bf16.msrb.mxu3 %v1128_v12 }
 0x44a   : > { %v1485_v45 = vsel %vm776_vm7, %v1214_v40, %v775_v44 }
 0x44b   : > { %v701_v14 = vpop.permute.xlu0 %700 }
 0x44c   : > { %v706_v15 = vsel %vm519_vm2, %v701_v14, 0  ;;  %v1193_v14 = vld [vmem:[%s1583_s8] ss:$0 sm:$0xff] }
 0x44d   : > { %715 = vmatpush.bf16.msrb.mxu2 %v706_v15  ;;  %927 = vmatpush.bf16.msrb.mxu3 %v1127_v13 }
 0x454   : > { %1066 = vmatmul.msk.bf16.vlgmr.msrb.gmra.mxu2 %vm482_vm1, %v699_v16 }
 0x4af   : > { %v654_v17 = vpop.f32.mrf.mxu1 }
 0x4b0   : > { %v658_v18 = vpack.c.bf16 %v654_v17, %v654_v17 }
 0x4b2   : > { %660 = vrot.lane.b32.xlu0 %v658_v18, %s1296_s23  ;;  %s1048_s23 = sshll.u32 %s429_s17, 2 }
 0x4b3   : > { %s431_s1 = scalar_lea.vmem [#allocation3], %s1048_s23  ;;  %s1241_s23 = scalar_lea.hbm %s1588_s13, 8 }
 0x4b4   : > { %s982_s2 = sshll.u32 %s431_s1, 4  ;;  %s983_s2 = int_to_ptr.vmem [resolvable:$true] %s982_s2 }
 0x4b7   : > { %v656_v19 = vpop.f32.mrf.mxu1 }
 0x4c7   : > { %v591_v20 = vpop.f32.mrf.mxu2 }
 0x4c8   : > { %v595_v21 = vpack.c.bf16 %v591_v20, %v591_v20 }
 0x4ca   : > { %597 = vrot.lane.b32.xlu1 %v595_v21, %s1297_s24  ;;  %s1118_s24 = sshll.u32 %s1391_s29, 2 }
 0x4cb   : > { %s980_s22 = scalar_lea.hbm %s1588_s13, %s1118_s24 }
 0x4cc   : > { %s984_s29 = sshll.u32 %s980_s22, 4  ;;  %s985_s29 = int_to_ptr.hbm [resolvable:$true] %s984_s29 }
 0x4cd   : > { %s1235_s15 = sshra.s32 %s985_s29, 4  ;;  %s1236_s15 = int_to_ptr.hbm [resolvable:$true] %s1235_s15 }
 0x4ce   : > { %s1237_s16 = scalar_lea.hbm %s1236_s15, 4  ;;  %p1242_p0 = scmp.lt.s32.totalorder %s1236_s15, %s1588_s13 }
 0x4cf   : > { %v593_v22 = vpop.f32.mrf.mxu2  ;;  %p1238_p11 = scmp.ne.s32.totalorder %s1236_s15, %s1237_s16  ;;  %p1243_p1 = scmp.lt.s32.totalorder %s1241_s23, %s1237_s16 }
 0x4d1   : > { %p1239_p12 = pnand %p1238_p11, %p1408_p5  ;;  %p1244_p2 = por %p1243_p1, %p1242_p0 }
 0x4d3   : > { %p1240_p13 = pneg %p1239_p12 }
 0x4d5   : > { %p1245_p3 = pnand %p1244_p2, %p1240_p13 }
 0x4d7   : > { %v717_v23 = vpop.f32.mrf.mxu2 }
 0x4d8   : > { %v721_v24 = vpack.c.bf16 %v717_v23, %v717_v23 }
 0x4da   : > { %723 = vrot.lane.b32.xlu0 %v721_v24, %s1298_s30  ;;  %s970_s30 = scalar_lea.sflag [#allocation4], %s429_s17 }
 0x4df   : > { %v719_v25 = vpop.f32.mrf.mxu2 }
 0x524   : > { %v661_v29 = vpop.permute.xlu0 %660 }
 0x53c   : > { %v598_v28 = vpop.permute.xlu1 %597 }
 0x53d   : > { %601 = vst.msk [vmem:[#allocation2] sm:$0xf] %vm600_vm4, %v598_v28 }
 0x53e   : > { %664 = vst.msk [vmem:[#allocation2] sm:$0xf] %vm663_vm5, %v661_v29 }
 0x54c   : > { %v724_v30 = vpop.permute.xlu0 %723 }
 0x54d   : > { %727 = vst.msk [vmem:[#allocation2] sm:$0xf] %vm726_vm6, %v724_v30 }
 0x554   : > { %v728_v31 = vld [vmem:[#allocation2] sm:$0xf] }
 0x555   : > { %1075 = vmatmul.msk.bf16.vlgmr.msra.gmra.mxu0 %vm459_vm0, %v728_v31 }
 0x5d2   : > { %v761_v34 = vpop.f32.mrf.mxu0 }
 0x5d3   : > { %v762_v35 = vadd.f32 %v1190_v32, %v761_v34 }
 0x5d5   : > { %v765_v36 = vadd.f32 %v762_v35, %v438_v33 }
 0x5d7   : > { %v768_v37 = vsel %vm459_vm0, %v765_v36, 0.0 }
 0x5d8   : > { %769 = vadd.xlane.f32.xlu0 %v768_v37 }
 0x5da   : > { %v763_v38 = vpop.f32.mrf.mxu0 }
 0x64b   : > { %v770_v46 = vpop.xlane.xlu0 %769 }
 0x64c   : > { %v778_v2 = vmul.f32 %v1485_v45, %v770_v46 }
 0x64e   : > { %v779_v47 = vsub.f32 %v765_v36, %v778_v2 }
 0x650   : > { %v780_v48 = vmul.f32 %v779_v47, %v779_v47 }
 0x652   : > { %v781_v49 = vsel %vm459_vm0, %v780_v48, 0.0 }
 0x653   : > { %782 = vadd.xlane.f32.xlu2 %v781_v49  ;;  %v1196_v49 = vld [vmem:[%s1587_s12] ss:$0 sm:$0xff] }
 0x6c6   : > { %v783_v53 = vpop.xlane.xlu2 %782 }
 0x6c7   : > { %v784_v54 = vmul.f32 %v783_v53, %v1485_v45 }
 0x6c9   : > { %v785_v55 = vadd.f32 1e-12, %v784_v54 }
 0x6cb   : > { %1215 = vrsqrt.f32 %v785_v55  ;;  %vm792_vm9 = vweird.f32 %v785_v55 }
 0x6d1   : > { %v1216_v56 = vpop.eup %1215 }
 0x6d2   : > { %v787_v57 = vmul.f32 %v1216_v56, %v785_v55  ;;  %vm793_vm8 = vweird.f32 %v1216_v56 }
 0x6d3   : > { %vm794_vm10 = vmor %vm792_vm9, %vm793_vm8 }
 0x6d4   : > { %v788_v58 = vmul.f32 %v1216_v56, %v787_v57 }
 0x6d6   : > { %v789_v59 = vmul.f32 0.5, %v788_v58 }
 0x6d8   : > { %v790_v60 = vsub.f32 1.5, %v789_v59 }
 0x6da   : > { %v791_v61 = vmul.f32 %v1216_v56, %v790_v60 }
 0x6dc   : > { %v795_v63 = vsel %vm794_vm10, %v1216_v56, %v791_v61 }
 0x6dd   : > { %v796_v1 = vmul.f32 %v795_v63, %v779_v47  ;;  %v1195_v47 = vld [vmem:[%s1586_s11] ss:$0 sm:$0xff] }
 0x6df   : > { %v800_v3 = vmul.f32 %v1191_v62, %v796_v1 }
 0x6e1   : > { %v804_v4 = vadd.f32 %v1192_v0, %v800_v3 }
 0x6e3   : > { %v805_v5 = vpack.c.bf16 %v804_v4, %v804_v4 }
 0x6e5   : > { %1084 = vmatmul.msk.bf16.vlgmr.msra.gmra.mxu1 %vm459_vm0, %v805_v5 }
 0x762   : > { %v838_v15 = vpop.f32.mrf.mxu1 }
 0x763   : > { %v839_v8 = vadd.f32 %v1193_v14, %v838_v15 }
 0x765   : > { %v842_v16 = vmul.f32 %v839_v8, %v839_v8 }
 0x767   : > { %v843_v17 = vmul.f32 %v842_v16, %v839_v8 }
 0x769   : > { %v844_v18 = vmul.f32 0.044715, %v843_v17 }
 0x76a   : > { %v840_v19 = vpop.f32.mrf.mxu1 }
 0x76b   : > { %v845_v20 = vadd.f32 %v844_v18, %v839_v8 }
 0x76d   : > { %v846_v21 = vmul.f32 0.7978846, %v845_v20 }
 0x76f   : > { %1217 = vtanh.f32 %v846_v21 }
 0x775   : > { %v1218_v22 = vpop.eup %1217 }
 0x776   : > { %v848_v23 = vadd.f32 1.0, %v1218_v22 }
 0x778   : > { %v849_v24 = vmul.f32 0.5, %v848_v23 }
 0x77a   : > { %v850_v25 = vmul.f32 %v849_v24, %v839_v8 }
 0x77c   : > { %v851_v26 = vpack.c.bf16 %v850_v25, %v850_v25 }
 0x77e   : > { %928 = vmatmul.bf16.vlgmr.msrb.gmra.mxu3 %v851_v26 }
 0x801   : > { %v929_v28 = vpop.f32.mrf.mxu3 }
 0x802   : > { %v930_v29 = vadd.f32 %v1194_v27, %v929_v28 }
 0x804   : > { %v933_v30 = vadd.f32 %v930_v29, %v804_v4 }
 0x806   : > { %v936_v31 = vsel %vm459_vm0, %v933_v30, 0.0 }
 0x807   : > { %937 = vadd.xlane.f32.xlu1 %v936_v31 }
 0x809   : > { %v931_v32 = vpop.f32.mrf.mxu3 }
 0x87a   : > { %v938_v33 = vpop.xlane.xlu1 %937 }
 0x87b   : > { %v939_v34 = vmul.f32 %v938_v33, %v1485_v45 }
 0x87d   : > { %v940_v35 = vsub.f32 %v933_v30, %v939_v34 }
 0x87f   : > { %v941_v36 = vmul.f32 %v940_v35, %v940_v35 }
 0x881   : > { %v942_v37 = vsel %vm459_vm0, %v941_v36, 0.0 }
 0x882   : > { %943 = vadd.xlane.f32.xlu0 %v942_v37 }
 0x8f5   : > { %v944_v38 = vpop.xlane.xlu0 %943 }
 0x8f6   : > { %v945_v39 = vmul.f32 %v944_v38, %v1485_v45 }
 0x8f8   : > { %v946_v40 = vadd.f32 1e-12, %v945_v39 }
 0x8fa   : > { %1219 = vrsqrt.f32 %v946_v40  ;;  %vm953_vm12 = vweird.f32 %v946_v40 }
 0x900   : > { %v1220_v41 = vpop.eup %1219 }
 0x901   : > { %v948_v42 = vmul.f32 %v1220_v41, %v946_v40  ;;  %vm954_vm11 = vweird.f32 %v1220_v41 }
 0x902   : > { %vm955_vm13 = vmor %vm953_vm12, %vm954_vm11 }
 0x903   : > { %v949_v43 = vmul.f32 %v1220_v41, %v948_v42 }
 0x905   : > { %v950_v44 = vmul.f32 0.5, %v949_v43 }
 0x907   : > { %v951_v46 = vsub.f32 1.5, %v950_v44 }
 0x909   : > { %v952_v2 = vmul.f32 %v1220_v41, %v951_v46 }
 0x90b   : > { %v956_v48 = vsel %vm955_vm13, %v1220_v41, %v952_v2 }
 0x90c   : > { %v957_v45 = vmul.f32 %v956_v48, %v940_v35 }
 0x90e   : > { %v961_v50 = vmul.f32 %v1195_v47, %v957_v45 }
 0x910   : > { %v965_v51 = vadd.f32 %v1196_v49, %v961_v50 }
 0x912   : > { %v966_v52 = vpack.c.bf16 %v965_v51, %v965_v51 }
 0x914   : > { %968 = vst.msk [vmem:[%s431_s1] sm:$0xf] %vm967_vm14, %v966_v52 }
 0x915   : > { %1248 = shalt.err (!%p1245_p3)
}
 0x916   : > { %1135 = dma.vmem_to_hbm [thread:$0]  (%p1408_p5), %s983_s2, 64, %s985_s29, %s970_s30  }
 0x917 PF: > { %p1141_p4 = scmp.ge.s32.totalorder %s1283_s28, 2  ;;  %s996_s1 = sand.u32 1, %s1271_s25  }
 0x918   : > { %s997_s17 = scalar_lea.sflag [#allocation4], %s996_s1 }
 0x919   : > { %p1138_p7 = pnand %p1141_p4, %p1412_p6 }
 0x91b   : > { %p1139_p8 = pneg %p1138_p7 }
 0x91d   : > { %1266 = dma.done.wait (%p1139_p8), %s997_s17, 64  }
 0x91e   : > { %1268 = vsyncadd (%p1139_p8), %s997_s17, 4294967232  ;;  %s1598_s22 = sld [smem:[#allocation6_spill]]  ;;  %p23_p9 = scmp.ge.s32.totalorder %s1395_s14, 4  }
 0x91f   : > { %s1599_s25 = smov %s1275_s26  ;;  %s1600_s26 = smov %s1279_s27 }
 0x920   : > { %s1602_s28 = smov %s1395_s14  ;;  %25 = sbr.rel (!%p23_p9) target bundleno = 7 (0x7), region = 107 }
 0x924   : > { %s1601_s27 = smov %s1598_s22 }
 0x925   :  { %1003 = vsyncpa [#allocation4], 1 }
 0x926   :  { %1005 = vsyncpa [#allocation4 + $0x1], 1 }

</bundles_post_ra>
